<compile_context>
chip_gen: v5e
topology: v5e:2x2
jax: 0.10.0
libtpu: 0.0.40
codegen_flags: <defaults>
</compile_context>

<pallas_src>
import jax
import jax.numpy as jnp
from jax.experimental import pallas as pl
from jax.experimental.pallas import tpu as pltpu


def _round_up(x, m):
    return (x + m - 1) // m * m


def _small_rho_kernel(xT_ref, w1_ref, b1_ref, w2_ref, b2_ref, out_ref):
    # xT_ref : (input_size, TILE_N)      batch rows along lanes
    # w1_ref : (hidden_pad, input_size)  b1_ref: (hidden_pad, 1)
    # w2_ref : (output_size, hidden_pad) b2_ref: (output_size, 1)
    # out_ref: (output_size, TILE_N)     lane-dense output row(s)
    h = jnp.dot(w1_ref[...], xT_ref[...], preferred_element_type=jnp.float32)
    h = jnp.maximum(h + b1_ref[...], 0.0)                      # (hidden_pad, TILE_N)
    out = jnp.dot(w2_ref[...], h, preferred_element_type=jnp.float32) + b2_ref[...]
    out_ref[...] = out.astype(out_ref.dtype)


def small_rho_forward(x, params, *, tile_n=4096):
    """x: (..., input_size) float32. params in torch layout. Returns (..., output_size)."""
    w1, b1, w2, b2 = params                 # (hid,in), (hid,), (out,hid), (out,)
    hidden, input_size = w1.shape
    output_size = w2.shape[0]

    lead_shape = x.shape[:-1]
    x2 = x.reshape(-1, input_size).astype(jnp.float32)
    n = x2.shape[0]

    # Pad hidden to a sublane multiple (10 -> 16). Exact: relu(0*x + 0) = 0 and the
    # padded w2 columns are zero, so padded sublanes contribute nothing.
    h_pad = _round_up(hidden, 8)
    w1p = jnp.zeros((h_pad, input_size), jnp.float32).at[:hidden, :].set(w1)
    b1p = jnp.zeros((h_pad, 1), jnp.float32).at[:hidden, 0].set(b1)
    w2p = jnp.zeros((output_size, h_pad), jnp.float32).at[:, :hidden].set(w2)
    b2p = b2.reshape(output_size, 1).astype(jnp.float32)

    # Batch-along-lanes: pad N to a lane multiple and transpose once in the wrapper.
    # (In-kernel transpose via the idle XLU is the zero-extra-HBM alternative.)
    n_pad = _round_up(max(n, 1), 128)
    xT = jnp.zeros((input_size, n_pad), jnp.float32).at[:, :n].set(x2.T)

    # Tile the lane (batch) axis. Aim for >= ~8 grid steps when n is large (v7x
    # megacore balance), but never below 512 lanes per tile (amortize ~0.35 us/step).
    # VMEM per tile is ~2 * 4 * (input_size + 8) * tile_n bytes -> tiny at any tile_n.
    tile_target = _round_up(-(-n_pad // 8), 128)
    tile_n = min(tile_n, max(512, tile_target))
    tile_n = max(128, min(tile_n, n_pad))
    grid = (pl.cdiv(n_pad, tile_n),)

    outT = pl.pallas_call(
        _small_rho_kernel,
        out_shape=jax.ShapeDtypeStruct((output_size, n_pad), jnp.float32),
        grid_spec=pltpu.PrefetchScalarGridSpec(
            num_scalar_prefetch=0,
            grid=grid,
            in_specs=[
                pl.BlockSpec((input_size, tile_n), lambda i: (0, i)),  # x^T tiles
                pl.BlockSpec((h_pad, input_size), lambda i: (0, 0)),   # W1 (resident)
                pl.BlockSpec((h_pad, 1), lambda i: (0, 0)),            # b1
                pl.BlockSpec((output_size, h_pad), lambda i: (0, 0)),  # W2
                pl.BlockSpec((output_size, 1), lambda i: (0, 0)),      # b2
            ],
            out_specs=pl.BlockSpec((output_size, tile_n), lambda i: (0, i)),
        ),
        compiler_params=pltpu.CompilerParams(
            dimension_semantics=("parallel",),      # batch tiles are independent
            vmem_limit_bytes=32 * 1024 * 1024,      # blocks are tiny; safe everywhere
        ),
    )(xT, w1p, b1p, w2p, b2p)

    out = outT[:, :n].T                             # (n, output_size); trivial for out=1
    return out.reshape(*lead_shape, output_size)


def init_params(key, input_size, hidden_size, output_size):
    """Deterministic torch-Linear-style init, torch layout: W is (out_features, in_features)."""
    ks = jax.random.split(key, 4)

    def linear(kw, kb, fan_in, fan_out):
        bound = 1.0 / jnp.sqrt(jnp.float32(fan_in))
        w = jax.random.uniform(kw, (fan_out, fan_in), jnp.float32, -bound, bound)
        b = jax.random.uniform(kb, (fan_out,), jnp.float32, -bound, bound)
        return w, b

    w1, b1 = linear(ks[0], ks[1], input_size, hidden_size)   # fc1
    w2, b2 = linear(ks[2], ks[3], hidden_size, output_size)  # fc2
    return (w1, b1, w2, b2)


def reference_forward(x, params):
    w1, b1, w2, b2 = params
    hp = jax.lax.Precision.HIGHEST
    h = jnp.maximum(jnp.einsum("...i,hi->...h", x, w1, precision=hp) + b1, 0.0)
    return jnp.einsum("...h,oh->...o", h, w2, precision=hp) + b2


if __name__ == "__main__":
    key = jax.random.PRNGKey(0)
    k_x, k_p = jax.random.split(key)

    # Small shapes consistent with SmallRho defaults (hidden_size=10, output_size=1).
    # Leading dims (4, 6) give n=24 rows — deliberately not a multiple of the lane
    # tile, exercising the padding / boundary path.
    input_size, hidden_size, output_size = 8, 10, 1
    x = jax.random.normal(k_x, (4, 6, input_size), jnp.float32)
    params = init_params(k_p, input_size, hidden_size, output_size)

    out = small_rho_forward(x, params)
    out = jax.block_until_ready(out)

    ref = reference_forward(x, params)
    assert out.shape == (4, 6, output_size), out.shape
    assert jnp.allclose(out, ref, atol=1e-5, rtol=1e-5), (out, ref)

    print("KERNEL_OK")
</pallas_src>

<mosaic_0001>
module attributes {stable_mosaic.version = 11 : i64} {
  func.func @_small_rho_kernel(%arg0: i32, %arg1: memref<8x128xf32, #tpu.memory_space<vmem>>, %arg2: memref<16x8xf32, #tpu.memory_space<vmem>>, %arg3: memref<16x1xf32, #tpu.memory_space<vmem>>, %arg4: memref<1x16xf32, #tpu.memory_space<vmem>>, %arg5: memref<1x1xf32, #tpu.memory_space<vmem>>, %arg6: memref<1x128xf32, #tpu.memory_space<vmem>>) attributes {dimension_semantics = [#tpu.dimension_semantics<parallel>], iteration_bounds = array<i64: 1>, scalar_prefetch = 0 : i64, scratch_operands = 0 : i64, tpu.core_type = #tpu.core_type<tc>, window_params = [{transform_indices = @transform_0, window_bounds = array<i64: 8, 128>}, {pipeline_mode = #tpu.pipeline_mode<synchronous>, transform_indices = @transform_1, window_bounds = array<i64: 16, 8>}, {pipeline_mode = #tpu.pipeline_mode<synchronous>, transform_indices = @transform_2, window_bounds = array<i64: 16, 1>}, {pipeline_mode = #tpu.pipeline_mode<synchronous>, transform_indices = @transform_3, window_bounds = array<i64: 1, 16>}, {pipeline_mode = #tpu.pipeline_mode<synchronous>, transform_indices = @transform_4, window_bounds = array<i64: 1, 1>}, {transform_indices = @transform_5, window_bounds = array<i64: 1, 128>}]} {
    %c0 = arith.constant 0 : index
    %c0_0 = arith.constant 0 : index
    %0 = vector.load %arg2[%c0, %c0_0] : memref<16x8xf32, #tpu.memory_space<vmem>>, vector<16x8xf32>
    %c0_1 = arith.constant 0 : index
    %c0_2 = arith.constant 0 : index
    %1 = vector.load %arg1[%c0_1, %c0_2] : memref<8x128xf32, #tpu.memory_space<vmem>>, vector<8x128xf32>
    %cst = arith.constant dense<0.000000e+00> : vector<16x128xf32>
    %2 = tpu.matmul %0, %1, %cst {dimension_numbers = #tpu.dot_dimension_numbers<[1], [0], [0], [1], [0, 0, 1, 1], [], []>} : vector<16x8xf32>, vector<8x128xf32>, vector<16x128xf32> -> vector<16x128xf32>
    %c0_3 = arith.constant 0 : index
    %c0_4 = arith.constant 0 : index
    %3 = vector.load %arg3[%c0_3, %c0_4] : memref<16x1xf32, #tpu.memory_space<vmem>>, vector<16x1xf32>
    %4 = vector.broadcast %3 : vector<16x1xf32> to vector<16x128xf32>
    %5 = arith.addf %2, %4 : vector<16x128xf32>
    %cst_5 = arith.constant 0.000000e+00 : f32
    %6 = vector.broadcast %cst_5 : f32 to vector<16x128xf32>
    %7 = arith.maximumf %5, %6 : vector<16x128xf32>
    %c0_6 = arith.constant 0 : index
    %c0_7 = arith.constant 0 : index
    %8 = vector.load %arg4[%c0_6, %c0_7] : memref<1x16xf32, #tpu.memory_space<vmem>>, vector<1x16xf32>
    %cst_8 = arith.constant dense<0.000000e+00> : vector<1x128xf32>
    %9 = tpu.matmul %8, %7, %cst_8 {dimension_numbers = #tpu.dot_dimension_numbers<[1], [0], [0], [1], [0, 0, 1, 1], [], []>} : vector<1x16xf32>, vector<16x128xf32>, vector<1x128xf32> -> vector<1x128xf32>
    %c0_9 = arith.constant 0 : index
    %c0_10 = arith.constant 0 : index
    %10 = vector.load %arg5[%c0_9, %c0_10] : memref<1x1xf32, #tpu.memory_space<vmem>>, vector<1x1xf32>
    %11 = vector.broadcast %10 : vector<1x1xf32> to vector<1x128xf32>
    %12 = arith.addf %9, %11 : vector<1x128xf32>
    %c0_11 = arith.constant 0 : index
    %c0_12 = arith.constant 0 : index
    %13 = vector.load %arg6[%c0_11, %c0_12] : memref<1x128xf32, #tpu.memory_space<vmem>>, vector<1x128xf32>
    tpu.vector_store %arg6[%c0_11, %c0_12], %12 {strides = array<i32>} : memref<1x128xf32, #tpu.memory_space<vmem>>, vector<1x128xf32>,
    return
  }
  func.func @transform_0(%arg0: i32) -> (i32, i32) {
    %c0_i32 = arith.constant 0 : i32
    %c0_i32_0 = arith.constant 0 : i32
    return %c0_i32, %arg0 : i32, i32
  }
  func.func @transform_1(%arg0: i32) -> (i32, i32) {
    %c0_i32 = arith.constant 0 : i32
    %c0_i32_0 = arith.constant 0 : i32
    %c0_i32_1 = arith.constant 0 : i32
    return %c0_i32, %c0_i32_0 : i32, i32
  }
  func.func @transform_2(%arg0: i32) -> (i32, i32) {
    %c0_i32 = arith.constant 0 : i32
    %c0_i32_0 = arith.constant 0 : i32
    %c0_i32_1 = arith.constant 0 : i32
    return %c0_i32, %c0_i32_0 : i32, i32
  }
  func.func @transform_3(%arg0: i32) -> (i32, i32) {
    %c0_i32 = arith.constant 0 : i32
    %c0_i32_0 = arith.constant 0 : i32
    %c0_i32_1 = arith.constant 0 : i32
    return %c0_i32, %c0_i32_0 : i32, i32
  }
  func.func @transform_4(%arg0: i32) -> (i32, i32) {
    %c0_i32 = arith.constant 0 : i32
    %c0_i32_0 = arith.constant 0 : i32
    %c0_i32_1 = arith.constant 0 : i32
    return %c0_i32, %c0_i32_0 : i32, i32
  }
  func.func @transform_5(%arg0: i32) -> (i32, i32) {
    %c0_i32 = arith.constant 0 : i32
    %c0_i32_0 = arith.constant 0 : i32
    return %c0_i32, %arg0 : i32, i32
  }
}

</mosaic_0001>

<bundles_post_ra>
// kernel: tpu_custom_call.1
= control target key start
LH: loop header
LB: loop body
LE: loop exit
PB: predicated region body
PF: predicated region fallthrough
CT: control target
= control target key end

     0   :  { %s209_s0 = inlined_call_operand.vmem [shape: f32[8,128], index: 0, kind: input, shape index: {}]   ;;  %s210_s1 = inlined_call_operand.vmem [shape: f32[16,8], index: 1, kind: input, shape index: {}]   ;;  %s211_s2 = inlined_call_operand.vmem [shape: f32[16,1], index: 2, kind: input, shape index: {}]   ;;  %s212_s3 = inlined_call_operand.vmem [shape: f32[1,16], index: 3, kind: input, shape index: {}]   ;;  %s213_s4 = inlined_call_operand.<no memory space> [shape: f32[1,1], index: 4, kind: input, shape index: {}]   ;;  %s214_s5 = inlined_call_operand.hbm [shape: f32[1,128], index: 5, kind: output, shape index: {}]  }
   0x1   :  { %v10_v0 = vstv %s213_s4 }
   0x2   :  { %11 = vst [vmem:[#allocation2] sm:$0x1] %v10_v0 }
   0x3   :  { %v25_v1 = vld [vmem:[%s209_s0] sm:$0xff]  ;;  %vm38_vm0 = vcmask 64512   ;;  %v24_v3 = vld [vmem:[%s210_s1 + $0x8] sm:$0xff] }
   0x4   :  { %v23_v2 = vld [vmem:[%s210_s1] sm:$0xff]  ;;  %60 = vmatpush.msra.mxu0 %v25_v1  ;;  %122 = vmatpush.msra.mxu2 %v25_v1  ;;  %v27_v4 = vld [vmem:[%s211_s2 + $0x8] sm:$0xff] }
   0x5   :  { %12 = vsyncpa [#allocation4], 0  ;;  %119 = vmatmul.msk.f32.vlgmr.msra.gmra.mxu0 %vm38_vm0, %v23_v2  ;;  %120 = vmatmul.msk.f32.vlgmr.msra.gmra.mxu2 %vm38_vm0, %v24_v3  ;;  %v153_v5 = vmov 0   ;;  %v26_v6 = vld [vmem:[%s211_s2] sm:$0xff]  ;;  %vm78_vm1 = vcmask 130048   ;;  %s154_s2 = smov [#allocation3]  }
   0x6   :  { %125 = vset.pattern.permute.xlu0 %v153_v5  ;;  %126 = vset.pattern.permute.xlu1 %v153_v5  ;;  %v70_v16 = vld [vmem:[%s212_s3] sm:$0x1]  ;;  %s108_s29 = sshll.u32 %s154_s2, 4  ;;  %s110_s7 = sshll.u32 %s214_s5, 4  ;;  %s109_s29 = int_to_ptr.vmem [resolvable:$true] %s108_s29  ;;  %s111_s7 = int_to_ptr.hbm [resolvable:$true] %s110_s7 }
   0x7   :  { %35 = vperm.xlu0 %125, %v27_v4  }
   0x9   :  { %v71_v7 = vld [vmem:[#allocation2] sm:$0x1] }
   0xa   :  { %74 = vperm.xlu1 %126, %v71_v7  }
   0xf   :  { %30 = vperm.xlu0 %125, %v26_v6  }
  0x79   :  { %v36_v8 = vpop.permute.xlu0 %35 }
  0x7c   :  { %v75_v17 = vpop.permute.xlu1 %74 }
  0x7d   :  { %v77_v18 = vperm.slane %v75_v17, 0 }
  0x81   :  { %v31_v9 = vpop.permute.xlu0 %30 }
  0x82   :  { %v62_v10 = vpop.f32.mrf.mxu0 }
  0x83   :  { %v63_v12 = vadd.f32 %v62_v10, %v31_v9 }
  0x85   :  { %v68_v15 = vmax.f32 %v63_v12, 0.0 }
  0x88   :  { %v65_v11 = vpop.f32.mrf.mxu2 }
  0x89   :  { %v66_v13 = vadd.f32 %v65_v11, %v36_v8 }
  0x8b   :  { %v69_v14 = vmax.f32 %v66_v13, 0.0 }
  0x8d   :  { %96 = vmatpush.msra.mxu1 %v69_v14 }
  0x8f   :  { %97 = vmatpush.msra.mxu1 %v68_v15 }
  0x90   :  { %121 = vmatmul.msk.f32.vlgmr.msra.gmra.mxu1 %vm78_vm1, %v70_v16 }
 0x10d   :  { %v99_v19 = vpop.f32.mrf.mxu1 }
 0x10e   :  { %v100_v20 = vadd.f32 %v99_v19, %v77_v18 }
 0x110   :  { %102 = vst [vmem:[#allocation3] sm:$0x1] %v100_v20 }
 0x111   :  { %113 = dma.vmem_to_hbm [thread:$0]  %s109_s29, 16, %s111_s7, [#allocation4]  }
 0x112   :  { %151 = dma.done.wait [#allocation4], 16  }
 0x113   :  { %152 = vsyncadd [#allocation4], 4294967280 }
 0x114   :  { %118 = vsyncpa [#allocation4], 1 }

</bundles_post_ra>
